<compile_context>
chip_gen: v7x
topology: tpu7x:2x2x1
jax: 0.10.0
libtpu: 0.0.40
codegen_flags: <defaults>
</compile_context>

<pallas_src>
import functools

import jax
import jax.numpy as jnp
from jax import lax
from jax.experimental import pallas as pl
from jax.experimental.pallas import tpu as pltpu


def _conv_relu_maxpool_kernel(x_ref, w_ref, b_ref, o_ref, *,
                              W, K, PK, Ly, L1, Lm, pad_w):
    # x_ref: (Cin, S)          bf16   slab = TB images, flat spatial, concat'd
    # w_ref: (K, Cout, K*Cin)  bf16   per-kh fused taps, contraction (kw, cin)
    # b_ref: (Cout, 1)         f32
    # o_ref: (Cout, Npad)      f32    lane-dense (Npad multiple of 128)
    x = x_ref[...]
    bias = b_ref[...]

    # ---- conv (stride=1, pad=0): one batched MXU dot per tap row kh,
    # contraction K*Cin, N = Ly ~ TB*H*W, accumulate in f32 ----------------
    acc = None
    for kh in range(K):
        base = kh * W
        taps = jnp.concatenate(
            [x[:, base + kw: base + kw + Ly] for kw in range(K)],
            axis=0)                                        # (K*Cin, Ly) bf16
        part = jnp.dot(w_ref[kh], taps,
                       preferred_element_type=jnp.float32)  # (Cout, Ly) f32
        acc = part if acc is None else acc + part

    # ---- bias + ReLU (f32) ------------------------------------------------
    y = jnp.maximum(acc + bias, 0.0)

    # ---- separable 3x3 max-pool (stride handled in the wrapper):
    # max along W, then along H, all on the flat slab ------------------------
    m1 = y[:, 0:L1]
    for dj in range(1, PK):
        m1 = jnp.maximum(m1, y[:, dj:dj + L1])
    m = m1[:, 0:Lm]
    for di in range(1, PK):
        off = di * W
        m = jnp.maximum(m, m1[:, off:off + Lm])

    # ---- single full-width lane-dense store; the zero tail is never
    # selected by the wrapper's stride-2 pick --------------------------------
    o_ref[...] = jnp.concatenate(
        [m, jnp.zeros((m.shape[0], pad_w), jnp.float32)], axis=-1)


def _per_image_vmem_bytes(HW, Cin, Cout):
    # rough per-image footprint: x block (bf16, x2 buffers) + out block
    # (f32, x2 buffers) + in-kernel temporaries (taps bf16, acc/y/m1/m f32)
    blocks = (4 * Cin + 8 * Cout) * HW
    temps = (6 * Cin + 12 * Cout) * HW
    return blocks + temps


def _dual_tensorcore():
    # Megacore (2 TensorCores per JAX device): v4 / v5p / v7x.  Default True
    # is harmless (costs one extra tiny grid step on single-TC chips).
    try:
        kind = jax.devices()[0].device_kind.lower()
    except Exception:
        return True
    return any(t in kind for t in ("v7", "v4", "v5p"))


def _pick_tb(B, HW, Cin, Cout, dual_tc):
    budget = 16 * 1024 * 1024
    per_img = max(1, _per_image_vmem_bytes(HW, Cin, Cout))
    tb = max(1, min(B, budget // per_img))
    if dual_tc and B >= 2:
        # keep >= 2 grid steps so ("parallel",) can shard across both cores
        tb = min(tb, max(1, B // 2))
    # blocking constraints: B % tb == 0 and, when tb < B, tb*HW % 128 == 0
    while tb > 1 and (B % tb != 0 or (tb < B and (tb * HW) % 128 != 0)):
        tb -= 1
    if tb < B and (tb * HW) % 128 != 0:
        tb = B  # fall back to a single full-batch step (full-dim block)
    return tb


def conv_relu_maxpool(x, w, b, *, kernel_size=3, stride=1, padding=0,
                      pool_k=3, pool_s=2, compute_dtype=jnp.bfloat16):
    assert stride == 1, "kernel implements the module defaults (conv stride=1)"
    if padding > 0:
        x = jnp.pad(x, ((0, 0), (0, 0), (padding, padding), (padding, padding)))

    B, Cin, H, W = x.shape
    Cout = w.shape[0]
    K = kernel_size
    Ho, Wo = H - K + 1, W - K + 1
    assert Ho >= pool_k and Wo >= pool_k, \
        f"degenerate spatial size: conv output {Ho}x{Wo} smaller than pool {pool_k}"
    Hp = (Ho - pool_k) // pool_s + 1
    Wp = (Wo - pool_k) // pool_s + 1
    HW = H * W

    dual_tc = _dual_tensorcore()
    TB = _pick_tb(B, HW, Cin, Cout, dual_tc)
    assert B % TB == 0
    nsteps = B // TB
    S = TB * HW                                   # slab width per grid step
    Npad = pl.cdiv(S, 128) * 128                  # lane-dense output width
    Ly = S - (K - 1) * W - (K - 1)                # conv extent over the slab
    L1 = Ly - (pool_k - 1)                        # after W-max
    Lm = L1 - (pool_k - 1) * W                    # after H-max
    assert Lm > 0
    pad_w = Npad - Lm

    # bf16 activations/weights (MXU fast path); f32 everywhere else.
    x_slab = x.transpose(1, 0, 2, 3).reshape(Cin, B * HW).astype(compute_dtype)
    # per-kh fused weight: (K, Cout, K*Cin), contraction order (kw, cin)
    w_fused = (w.transpose(2, 0, 3, 1)
                .reshape(K, Cout, K * Cin)
                .astype(compute_dtype))
    b_r = b.reshape(Cout, 1).astype(jnp.float32)

    kernel = functools.partial(
        _conv_relu_maxpool_kernel,
        W=W, K=K, PK=pool_k, Ly=Ly, L1=L1, Lm=Lm, pad_w=pad_w)

    est = TB * _per_image_vmem_bytes(HW, Cin, Cout) + 64 * 1024
    vmem_limit = int(min(64 * 2**20, max(32 * 2**20, 2 * est)))
    params = pltpu.CompilerParams(
        dimension_semantics=("parallel",),
        vmem_limit_bytes=vmem_limit)

    def build(single_buffer_consts):
        const_kw = ({"pipeline_mode": pl.Buffered(1)}
                    if single_buffer_consts else {})
        in_specs = [
            pl.BlockSpec((Cin, S), lambda bb: (0, bb)),
            pl.BlockSpec((K, Cout, K * Cin), lambda bb: (0, 0, 0), **const_kw),
            pl.BlockSpec((Cout, 1), lambda bb: (0, 0), **const_kw),
        ]
        return pl.pallas_call(
            kernel,
            out_shape=jax.ShapeDtypeStruct((Cout, nsteps * Npad), jnp.float32),
            grid_spec=pltpu.PrefetchScalarGridSpec(
                num_scalar_prefetch=0,
                grid=(nsteps,),
                in_specs=in_specs,
                out_specs=pl.BlockSpec((Cout, Npad), lambda bb: (0, bb)),
            ),
            compiler_params=params,
        )

    try:
        out_flat = build(True)(x_slab, w_fused, b_r)
    except Exception:
        # fall back to default (double) buffering of the tiny constants if
        # pipeline_mode=pl.Buffered(1) is unsupported in this jax version.
        out_flat = build(False)(x_slab, w_fused, b_r)

    # ---- wrapper-side layout plumbing: drop per-step lane padding, view as
    # rows, stride-2 pick of the pooled map, NCHW transpose -------------------
    y = out_flat.reshape(Cout, nsteps, Npad)[:, :, :S]
    y = y.reshape(Cout, B, H, W)
    y = y[:, :, 0:pool_s * (Hp - 1) + 1:pool_s, 0:pool_s * (Wp - 1) + 1:pool_s]
    return jnp.transpose(y, (1, 0, 2, 3))         # (B, Cout, Hp, Wp)


def _reference(x, w, b, compute_dtype):
    # apples-to-apples: round inputs the same way the kernel does (bf16),
    # accumulate in f32 (HIGHEST precision), keep the rest in f32.
    xq = x.astype(compute_dtype).astype(jnp.float32)
    wq = w.astype(compute_dtype).astype(jnp.float32)
    y = lax.conv_general_dilated(
        xq, wq, window_strides=(1, 1), padding="VALID",
        dimension_numbers=("NCHW", "OIHW", "NCHW"),
        precision=lax.Precision.HIGHEST)
    y = jnp.maximum(y + b[None, :, None, None], 0.0)
    y = lax.reduce_window(y, -jnp.inf, lax.max,
                          (1, 1, 3, 3), (1, 1, 2, 2), "VALID")
    return y


if __name__ == "__main__":
    B, Cin, Cout, H, W = 2, 4, 8, 16, 16
    K = 3

    key = jax.random.PRNGKey(0)
    k1, k2, k3 = jax.random.split(key, 3)
    x = jax.random.normal(k1, (B, Cin, H, W), dtype=jnp.float32)
    # deterministic synthetic parameters (Conv2d weight: (Cout, Cin, K, K))
    weight = 0.1 * jax.random.normal(k2, (Cout, Cin, K, K), dtype=jnp.float32)
    bias = 0.1 * jax.random.normal(k3, (Cout,), dtype=jnp.float32)

    out = conv_relu_maxpool(x, weight, bias, kernel_size=K, stride=1, padding=0)
    out = jax.block_until_ready(out)

    ref = _reference(x, weight, bias, jnp.bfloat16)
    assert out.shape == ref.shape, (out.shape, ref.shape)
    assert jnp.allclose(out, ref, atol=1e-3, rtol=1e-3), "mismatch vs JAX reference"

    print("KERNEL_OK")
</pallas_src>

<mosaic_0001>
module attributes {stable_mosaic.version = 11 : i64} {
  func.func @_conv_relu_maxpool_kernel(%arg0: i32, %arg1: memref<4x512xbf16, #tpu.memory_space<vmem>>, %arg2: memref<3x8x12xbf16, #tpu.memory_space<vmem>>, %arg3: memref<8x1xf32, #tpu.memory_space<vmem>>, %arg4: memref<8x512xf32, #tpu.memory_space<vmem>>) attributes {dimension_semantics = [#tpu.dimension_semantics<parallel>], iteration_bounds = array<i64: 1>, scalar_prefetch = 0 : i64, scratch_operands = 0 : i64, tpu.core_type = #tpu.core_type<tc>, window_params = [{transform_indices = @transform_0, window_bounds = array<i64: 4, 512>}, {pipeline_mode = #tpu.pipeline_mode<synchronous>, transform_indices = @transform_1, window_bounds = array<i64: 3, 8, 12>}, {pipeline_mode = #tpu.pipeline_mode<synchronous>, transform_indices = @transform_2, window_bounds = array<i64: 8, 1>}, {transform_indices = @transform_3, window_bounds = array<i64: 8, 512>}]} {
    %c0 = arith.constant 0 : index
    %c0_0 = arith.constant 0 : index
    %0 = vector.load %arg1[%c0, %c0_0] : memref<4x512xbf16, #tpu.memory_space<vmem>>, vector<4x512xbf16>
    %c0_1 = arith.constant 0 : index
    %c0_2 = arith.constant 0 : index
    %1 = vector.load %arg3[%c0_1, %c0_2] : memref<8x1xf32, #tpu.memory_space<vmem>>, vector<8x1xf32>
    %2 = vector.extract_strided_slice %0 {offsets = [0, 0], sizes = [4, 478], strides = [1, 1]} : vector<4x512xbf16> to vector<4x478xbf16>
    %3 = vector.extract_strided_slice %0 {offsets = [0, 1], sizes = [4, 478], strides = [1, 1]} : vector<4x512xbf16> to vector<4x478xbf16>
    %4 = vector.extract_strided_slice %0 {offsets = [0, 2], sizes = [4, 478], strides = [1, 1]} : vector<4x512xbf16> to vector<4x478xbf16>
    %5 = tpu.concatenate %2, %3, %4 in 0 : vector<4x478xbf16>, vector<4x478xbf16>, vector<4x478xbf16> -> vector<12x478xbf16>
    %c0_3 = arith.constant 0 : index
    %c0_4 = arith.constant 0 : index
    %c0_5 = arith.constant 0 : index
    %6 = vector.load %arg2[%c0_3, %c0_4, %c0_5] : memref<3x8x12xbf16, #tpu.memory_space<vmem>>, vector<1x8x12xbf16>
    %7 = vector.shape_cast %6 : vector<1x8x12xbf16> to vector<8x12xbf16>
    %cst = arith.constant dense<0.000000e+00> : vector<8x478xf32>
    %8 = tpu.matmul %7, %5, %cst {dimension_numbers = #tpu.dot_dimension_numbers<[1], [0], [0], [1], [0, 0, 1, 1], [], []>} : vector<8x12xbf16>, vector<12x478xbf16>, vector<8x478xf32> -> vector<8x478xf32>
    %9 = vector.extract_strided_slice %0 {offsets = [0, 16], sizes = [4, 478], strides = [1, 1]} : vector<4x512xbf16> to vector<4x478xbf16>
    %10 = vector.extract_strided_slice %0 {offsets = [0, 17], sizes = [4, 478], strides = [1, 1]} : vector<4x512xbf16> to vector<4x478xbf16>
    %11 = vector.extract_strided_slice %0 {offsets = [0, 18], sizes = [4, 478], strides = [1, 1]} : vector<4x512xbf16> to vector<4x478xbf16>
    %12 = tpu.concatenate %9, %10, %11 in 0 : vector<4x478xbf16>, vector<4x478xbf16>, vector<4x478xbf16> -> vector<12x478xbf16>
    %c1 = arith.constant 1 : index
    %c0_6 = arith.constant 0 : index
    %c0_7 = arith.constant 0 : index
    %13 = vector.load %arg2[%c1, %c0_6, %c0_7] : memref<3x8x12xbf16, #tpu.memory_space<vmem>>, vector<1x8x12xbf16>
    %14 = vector.shape_cast %13 : vector<1x8x12xbf16> to vector<8x12xbf16>
    %cst_8 = arith.constant dense<0.000000e+00> : vector<8x478xf32>
    %15 = tpu.matmul %14, %12, %cst_8 {dimension_numbers = #tpu.dot_dimension_numbers<[1], [0], [0], [1], [0, 0, 1, 1], [], []>} : vector<8x12xbf16>, vector<12x478xbf16>, vector<8x478xf32> -> vector<8x478xf32>
    %16 = arith.addf %8, %15 : vector<8x478xf32>
    %17 = vector.extract_strided_slice %0 {offsets = [0, 32], sizes = [4, 478], strides = [1, 1]} : vector<4x512xbf16> to vector<4x478xbf16>
    %18 = vector.extract_strided_slice %0 {offsets = [0, 33], sizes = [4, 478], strides = [1, 1]} : vector<4x512xbf16> to vector<4x478xbf16>
    %19 = vector.extract_strided_slice %0 {offsets = [0, 34], sizes = [4, 478], strides = [1, 1]} : vector<4x512xbf16> to vector<4x478xbf16>
    %20 = tpu.concatenate %17, %18, %19 in 0 : vector<4x478xbf16>, vector<4x478xbf16>, vector<4x478xbf16> -> vector<12x478xbf16>
    %c2 = arith.constant 2 : index
    %c0_9 = arith.constant 0 : index
    %c0_10 = arith.constant 0 : index
    %21 = vector.load %arg2[%c2, %c0_9, %c0_10] : memref<3x8x12xbf16, #tpu.memory_space<vmem>>, vector<1x8x12xbf16>
    %22 = vector.shape_cast %21 : vector<1x8x12xbf16> to vector<8x12xbf16>
    %cst_11 = arith.constant dense<0.000000e+00> : vector<8x478xf32>
    %23 = tpu.matmul %22, %20, %cst_11 {dimension_numbers = #tpu.dot_dimension_numbers<[1], [0], [0], [1], [0, 0, 1, 1], [], []>} : vector<8x12xbf16>, vector<12x478xbf16>, vector<8x478xf32> -> vector<8x478xf32>
    %24 = arith.addf %16, %23 : vector<8x478xf32>
    %25 = vector.broadcast %1 : vector<8x1xf32> to vector<8x478xf32>
    %26 = arith.addf %24, %25 : vector<8x478xf32>
    %cst_12 = arith.constant 0.000000e+00 : f32
    %27 = vector.broadcast %cst_12 : f32 to vector<8x478xf32>
    %28 = arith.maximumf %26, %27 : vector<8x478xf32>
    %29 = vector.extract_strided_slice %28 {offsets = [0, 0], sizes = [8, 476], strides = [1, 1]} : vector<8x478xf32> to vector<8x476xf32>
    %30 = vector.extract_strided_slice %28 {offsets = [0, 1], sizes = [8, 476], strides = [1, 1]} : vector<8x478xf32> to vector<8x476xf32>
    %31 = arith.maximumf %29, %30 : vector<8x476xf32>
    %32 = vector.extract_strided_slice %28 {offsets = [0, 2], sizes = [8, 476], strides = [1, 1]} : vector<8x478xf32> to vector<8x476xf32>
    %33 = arith.maximumf %31, %32 : vector<8x476xf32>
    %34 = vector.extract_strided_slice %33 {offsets = [0, 0], sizes = [8, 444], strides = [1, 1]} : vector<8x476xf32> to vector<8x444xf32>
    %35 = vector.extract_strided_slice %33 {offsets = [0, 16], sizes = [8, 444], strides = [1, 1]} : vector<8x476xf32> to vector<8x444xf32>
    %36 = arith.maximumf %34, %35 : vector<8x444xf32>
    %37 = vector.extract_strided_slice %33 {offsets = [0, 32], sizes = [8, 444], strides = [1, 1]} : vector<8x476xf32> to vector<8x444xf32>
    %38 = arith.maximumf %36, %37 : vector<8x444xf32>
    %cst_13 = arith.constant 0.000000e+00 : f32
    %39 = vector.broadcast %cst_13 : f32 to vector<8x68xf32>
    %40 = tpu.concatenate %38, %39 in 1 : vector<8x444xf32>, vector<8x68xf32> -> vector<8x512xf32>
    %c0_14 = arith.constant 0 : index
    %c0_15 = arith.constant 0 : index
    %41 = vector.load %arg4[%c0_14, %c0_15] : memref<8x512xf32, #tpu.memory_space<vmem>>, vector<8x512xf32>
    tpu.vector_store %arg4[%c0_14, %c0_15], %40 {strides = array<i32>} : memref<8x512xf32, #tpu.memory_space<vmem>>, vector<8x512xf32>,
    return
  }
  func.func @transform_0(%arg0: i32) -> (i32, i32) {
    %c0_i32 = arith.constant 0 : i32
    %c0_i32_0 = arith.constant 0 : i32
    return %c0_i32, %arg0 : i32, i32
  }
  func.func @transform_1(%arg0: i32) -> (i32, i32, i32) {
    %c0_i32 = arith.constant 0 : i32
    %c0_i32_0 = arith.constant 0 : i32
    %c0_i32_1 = arith.constant 0 : i32
    %c0_i32_2 = arith.constant 0 : i32
    return %c0_i32, %c0_i32_0, %c0_i32_1 : i32, i32, i32
  }
  func.func @transform_2(%arg0: i32) -> (i32, i32) {
    %c0_i32 = arith.constant 0 : i32
    %c0_i32_0 = arith.constant 0 : i32
    %c0_i32_1 = arith.constant 0 : i32
    return %c0_i32, %c0_i32_0 : i32, i32
  }
  func.func @transform_3(%arg0: i32) -> (i32, i32) {
    %c0_i32 = arith.constant 0 : i32
    %c0_i32_0 = arith.constant 0 : i32
    return %c0_i32, %arg0 : i32, i32
  }
}

module attributes {stable_mosaic.version = 11 : i64} {
  func.func @_conv_relu_maxpool_kernel(%arg0: i32, %arg1: memref<4x512xbf16, #tpu.memory_space<vmem>>, %arg2: memref<3x8x12xbf16, #tpu.memory_space<vmem>>, %arg3: memref<8x1xf32, #tpu.memory_space<vmem>>, %arg4: memref<8x512xf32, #tpu.memory_space<vmem>>) attributes {dimension_semantics = [#tpu.dimension_semantics<parallel>], iteration_bounds = array<i64: 1>, scalar_prefetch = 0 : i64, scratch_operands = 0 : i64, tpu.core_type = #tpu.core_type<tc>, window_params = [{transform_indices = @transform_0, window_bounds = array<i64: 4, 512>}, {pipeline_mode = #tpu.pipeline_mode<synchronous>, transform_indices = @transform_1, window_bounds = array<i64: 3, 8, 12>}, {pipeline_mode = #tpu.pipeline_mode<synchronous>, transform_indices = @transform_2, window_bounds = array<i64: 8, 1>}, {transform_indices = @transform_3, window_bounds = array<i64: 8, 512>}]} {
    %c0 = arith.constant 0 : index
    %c0_0 = arith.constant 0 : index
    %0 = vector.load %arg1[%c0, %c0_0] : memref<4x512xbf16, #tpu.memory_space<vmem>>, vector<4x512xbf16>
    %c0_1 = arith.constant 0 : index
    %c0_2 = arith.constant 0 : index
    %1 = vector.load %arg3[%c0_1, %c0_2] : memref<8x1xf32, #tpu.memory_space<vmem>>, vector<8x1xf32>
    %2 = vector.extract_strided_slice %0 {offsets = [0, 0], sizes = [4, 478], strides = [1, 1]} : vector<4x512xbf16> to vector<4x478xbf16>
    %3 = vector.extract_strided_slice %0 {offsets = [0, 1], sizes = [4, 478], strides = [1, 1]} : vector<4x512xbf16> to vector<4x478xbf16>
    %4 = vector.extract_strided_slice %0 {offsets = [0, 2], sizes = [4, 478], strides = [1, 1]} : vector<4x512xbf16> to vector<4x478xbf16>
    %5 = tpu.concatenate %2, %3, %4 in 0 : vector<4x478xbf16>, vector<4x478xbf16>, vector<4x478xbf16> -> vector<12x478xbf16>
    %c0_3 = arith.constant 0 : index
    %c0_4 = arith.constant 0 : index
    %c0_5 = arith.constant 0 : index
    %6 = vector.load %arg2[%c0_3, %c0_4, %c0_5] : memref<3x8x12xbf16, #tpu.memory_space<vmem>>, vector<1x8x12xbf16>
    %7 = vector.shape_cast %6 : vector<1x8x12xbf16> to vector<8x12xbf16>
    %cst = arith.constant dense<0.000000e+00> : vector<8x478xf32>
    %8 = tpu.matmul %7, %5, %cst {dimension_numbers = #tpu.dot_dimension_numbers<[1], [0], [0], [1], [0, 0, 1, 1], [], []>} : vector<8x12xbf16>, vector<12x478xbf16>, vector<8x478xf32> -> vector<8x478xf32>
    %9 = vector.extract_strided_slice %0 {offsets = [0, 16], sizes = [4, 478], strides = [1, 1]} : vector<4x512xbf16> to vector<4x478xbf16>
    %10 = vector.extract_strided_slice %0 {offsets = [0, 17], sizes = [4, 478], strides = [1, 1]} : vector<4x512xbf16> to vector<4x478xbf16>
    %11 = vector.extract_strided_slice %0 {offsets = [0, 18], sizes = [4, 478], strides = [1, 1]} : vector<4x512xbf16> to vector<4x478xbf16>
    %12 = tpu.concatenate %9, %10, %11 in 0 : vector<4x478xbf16>, vector<4x478xbf16>, vector<4x478xbf16> -> vector<12x478xbf16>
    %c1 = arith.constant 1 : index
    %c0_6 = arith.constant 0 : index
    %c0_7 = arith.constant 0 : index
    %13 = vector.load %arg2[%c1, %c0_6, %c0_7] : memref<3x8x12xbf16, #tpu.memory_space<vmem>>, vector<1x8x12xbf16>
    %14 = vector.shape_cast %13 : vector<1x8x12xbf16> to vector<8x12xbf16>
    %cst_8 = arith.constant dense<0.000000e+00> : vector<8x478xf32>
    %15 = tpu.matmul %14, %12, %cst_8 {dimension_numbers = #tpu.dot_dimension_numbers<[1], [0], [0], [1], [0, 0, 1, 1], [], []>} : vector<8x12xbf16>, vector<12x478xbf16>, vector<8x478xf32> -> vector<8x478xf32>
    %16 = arith.addf %8, %15 : vector<8x478xf32>
    %17 = vector.extract_strided_slice %0 {offsets = [0, 32], sizes = [4, 478], strides = [1, 1]} : vector<4x512xbf16> to vector<4x478xbf16>
    %18 = vector.extract_strided_slice %0 {offsets = [0, 33], sizes = [4, 478], strides = [1, 1]} : vector<4x512xbf16> to vector<4x478xbf16>
    %19 = vector.extract_strided_slice %0 {offsets = [0, 34], sizes = [4, 478], strides = [1, 1]} : vector<4x512xbf16> to vector<4x478xbf16>
    %20 = tpu.concatenate %17, %18, %19 in 0 : vector<4x478xbf16>, vector<4x478xbf16>, vector<4x478xbf16> -> vector<12x478xbf16>
    %c2 = arith.constant 2 : index
    %c0_9 = arith.constant 0 : index
    %c0_10 = arith.constant 0 : index
    %21 = vector.load %arg2[%c2, %c0_9, %c0_10] : memref<3x8x12xbf16, #tpu.memory_space<vmem>>, vector<1x8x12xbf16>
    %22 = vector.shape_cast %21 : vector<1x8x12xbf16> to vector<8x12xbf16>
    %cst_11 = arith.constant dense<0.000000e+00> : vector<8x478xf32>
    %23 = tpu.matmul %22, %20, %cst_11 {dimension_numbers = #tpu.dot_dimension_numbers<[1], [0], [0], [1], [0, 0, 1, 1], [], []>} : vector<8x12xbf16>, vector<12x478xbf16>, vector<8x478xf32> -> vector<8x478xf32>
    %24 = arith.addf %16, %23 : vector<8x478xf32>
    %25 = vector.broadcast %1 : vector<8x1xf32> to vector<8x478xf32>
    %26 = arith.addf %24, %25 : vector<8x478xf32>
    %cst_12 = arith.constant 0.000000e+00 : f32
    %27 = vector.broadcast %cst_12 : f32 to vector<8x478xf32>
    %28 = arith.maximumf %26, %27 : vector<8x478xf32>
    %29 = vector.extract_strided_slice %28 {offsets = [0, 0], sizes = [8, 476], strides = [1, 1]} : vector<8x478xf32> to vector<8x476xf32>
    %30 = vector.extract_strided_slice %28 {offsets = [0, 1], sizes = [8, 476], strides = [1, 1]} : vector<8x478xf32> to vector<8x476xf32>
    %31 = arith.maximumf %29, %30 : vector<8x476xf32>
    %32 = vector.extract_strided_slice %28 {offsets = [0, 2], sizes = [8, 476], strides = [1, 1]} : vector<8x478xf32> to vector<8x476xf32>
    %33 = arith.maximumf %31, %32 : vector<8x476xf32>
    %34 = vector.extract_strided_slice %33 {offsets = [0, 0], sizes = [8, 444], strides = [1, 1]} : vector<8x476xf32> to vector<8x444xf32>
    %35 = vector.extract_strided_slice %33 {offsets = [0, 16], sizes = [8, 444], strides = [1, 1]} : vector<8x476xf32> to vector<8x444xf32>
    %36 = arith.maximumf %34, %35 : vector<8x444xf32>
    %37 = vector.extract_strided_slice %33 {offsets = [0, 32], sizes = [8, 444], strides = [1, 1]} : vector<8x476xf32> to vector<8x444xf32>
    %38 = arith.maximumf %36, %37 : vector<8x444xf32>
    %cst_13 = arith.constant 0.000000e+00 : f32
    %39 = vector.broadcast %cst_13 : f32 to vector<8x68xf32>
    %40 = tpu.concatenate %38, %39 in 1 : vector<8x444xf32>, vector<8x68xf32> -> vector<8x512xf32>
    %c0_14 = arith.constant 0 : index
    %c0_15 = arith.constant 0 : index
    %41 = vector.load %arg4[%c0_14, %c0_15] : memref<8x512xf32, #tpu.memory_space<vmem>>, vector<8x512xf32>
    tpu.vector_store %arg4[%c0_14, %c0_15], %40 {strides = array<i32>} : memref<8x512xf32, #tpu.memory_space<vmem>>, vector<8x512xf32>,
    return
  }
  func.func @transform_0(%arg0: i32) -> (i32, i32) {
    %c0_i32 = arith.constant 0 : i32
    %c0_i32_0 = arith.constant 0 : i32
    return %c0_i32, %arg0 : i32, i32
  }
  func.func @transform_1(%arg0: i32) -> (i32, i32, i32) {
    %c0_i32 = arith.constant 0 : i32
    %c0_i32_0 = arith.constant 0 : i32
    %c0_i32_1 = arith.constant 0 : i32
    %c0_i32_2 = arith.constant 0 : i32
    return %c0_i32, %c0_i32_0, %c0_i32_1 : i32, i32, i32
  }
  func.func @transform_2(%arg0: i32) -> (i32, i32) {
    %c0_i32 = arith.constant 0 : i32
    %c0_i32_0 = arith.constant 0 : i32
    %c0_i32_1 = arith.constant 0 : i32
    return %c0_i32, %c0_i32_0 : i32, i32
  }
  func.func @transform_3(%arg0: i32) -> (i32, i32) {
    %c0_i32 = arith.constant 0 : i32
    %c0_i32_0 = arith.constant 0 : i32
    return %c0_i32, %arg0 : i32, i32
  }
}

</mosaic_0001>

<bundles_post_ra>
// kernel: tpu_custom_call.1
= control target key start
LH: loop header
LB: loop body
LE: loop exit
PB: predicated region body
PF: predicated region fallthrough
CT: control target
= control target key end

     0   :  { %8 = vsyncpa [#allocation3], 0  ;;  %s779_s0 = inlined_call_operand.hbm [shape: bf16[4,512], index: 0, kind: input, shape index: {}]   ;;  %s780_s1 = inlined_call_operand.vmem [shape: bf16[3,8,12], index: 1, kind: input, shape index: {}]   ;;  %s781_s2 = inlined_call_operand.vmem [shape: f32[8,1], index: 2, kind: input, shape index: {}]   ;;  %s782_s3 = inlined_call_operand.hbm [shape: f32[8,512], index: 3, kind: output, shape index: {}]  }
   0x1   :  { %9 = vsyncpa [#allocation4], 0  ;;  %s626_s12 = smov [#allocation2]   ;;  %s578_s16 = scalar_lea.hbm %s779_s0, 128 }
   0x2   :  { %s16_s13 = sshll.u32 %s626_s12, 4  ;;  %p579_p0 = scmp.ne.s32.totalorder %s779_s0, %s578_s16  ;;  %s17_s13 = int_to_ptr.vmem [resolvable:$true] %s16_s13 }
   0x3   :  { %p582_p1 = scmp.lt.u32.totalorder %s578_s16, %s779_s0 }
   0x5   :  { %p584_p2 = pnand %p582_p1, %p579_p0 }
   0x7   :  { %587 = shalt.err (!%p584_p2)
}
   0x8   :  { %s588_s21 = scalar_lea.vmem %s17_s13, 128  ;;  %p593_p4 = scmp.lt.s32.totalorder %s17_s13, %s17_s13 }
   0x9   :  { %p589_p3 = scmp.ne.s32.totalorder %s17_s13, %s588_s21  ;;  %p594_p5 = scmp.lt.s32.totalorder %s588_s21, %s588_s21 }
   0xb   :  { %p595_p6 = por %p594_p5, %p593_p4 }
   0xd   :  { %p596_p7 = pnand %p595_p6, %p589_p3 }
   0xf   :  { %599 = shalt.err (!%p596_p7)
}
  0x10   :  { %19 = dma.hbm_to_vmem [thread:$0]  %s779_s0, 128, %s17_s13, [#allocation3]  }
  0x11   :  { %622 = dma.done.wait [#allocation3], 128  }
  0x12   :  { %623 = vsyncadd [#allocation3], 4294967168  ;;  %v35_v0 = vlaneseq  ;;  %v627_v1 = vmov 1983009808   ;;  %v28_v6 = vld [vmem:[#allocation2] sm:$0xff]  ;;  %s628_s24 = smov 127  }
  0x13   :  { %v33_v2 = vunpack.c.l.s4 %v627_v1  ;;  %v48_v8 = vcombine.low %v28_v6, %v28_v6  ;;  %v31_v11 = vcombine.high %v28_v6, %v28_v6  ;;  %s629_s0 = smov 126   ;;  %vm79_vm0 = vcmask 1031168   ;;  %s631_s25 = smov 112   ;;  %v29_v40 = vld [vmem:[%s781_s2] sm:$0xff]  ;;  %v562_v63 = vld [vmem:[%s780_s1 + $0x8] sm:$0xf] }
  0x14   :  { %v36_v3 = vshrl.u32 %v35_v0, 7  ;;  %vm65_vm1 = vcmask 1039360   ;;  %v630_v21 = vmov 0   ;;  %vm96_vm2 = vcmask 1043456   ;;  %s632_s26 = smov 96  }
  0x15   :  { %v34_v4 = vunpack.c.0.s8 %v33_v2  ;;  %173 = vmatprep.mubr.bf16.mxu0 %v630_v21  ;;  %214 = vmatprep.mubr.bf16.mxu1 %v630_v21  ;;  %vm83_vm3 = vcmask 1041408   ;;  %vm120_vm4 = vcmask 916480   ;;  %vm128_vm5 = vcmask 1045504   ;;  %v553_v48 = vld [vmem:[%s780_s1 + $0x4] sm:$0xf] }
  0x16   :  { %575 = vset.pattern.permute.xlu0 %v630_v21  ;;  %vm124_vm6 = vcmask 97280   ;;  %vm326_vm7 = vcmask 785408   ;;  %v105_v59 = vld [vmem:[%s780_s1] sm:$0xf]  ;;  %vm532_vm8 = vcmask 490496   ;;  %s633_s1 = smov [#allocation5]  }
  0x17   :  { %v37_v5 = vsub.s32 %v34_v4, %v36_v3  ;;  %s544_s7 = sshll.u32 %s633_s1, 4  ;;  %s545_s7 = int_to_ptr.vmem [resolvable:$true] %s544_s7 }
  0x18   :  { %s600_s8 = scalar_lea.vmem %s545_s7, 512  ;;  %p605_p9 = scmp.lt.s32.totalorder %s545_s7, %s545_s7 }
  0x19   :  { %v38_v7 = vrot.slane %v28_v6, %v37_v5  ;;  %v55_v9 = vrot.slane %v48_v8, %v37_v5  ;;  %v45_v14 = vrot.slane %v31_v11, %v37_v5  ;;  %p601_p8 = scmp.ne.s32.totalorder %s545_s7, %s600_s8  ;;  %p606_p10 = scmp.lt.s32.totalorder %s600_s8, %s600_s8 }
  0x1b   :  { %61 = vrot.lane.b32.xlu1 %v38_v7, %s628_s24  ;;  %57 = vrot.lane.b32.xlu0 %v55_v9, %s628_s24  ;;  %v69_v10 = vcombine.low %v38_v7, %v38_v7  ;;  %v46_v12 = vcombine.high %v38_v7, %v38_v7  ;;  %v56_v13 = vcombine.high %v55_v9, %v55_v9  ;;  %p607_p11 = por %p606_p10, %p605_p9 }
  0x1c   :  { %v70_v15 = vcombine.low %v45_v14, %v45_v14  ;;  %v47_v28 = vcombine.high %v45_v14, %v45_v14 }
  0x1d   :  { %p608_p12 = pnand %p607_p11, %p601_p8 }
  0x1f   :  { %73 = vrot.lane.b32.xlu1 %v38_v7, %s629_s0  ;;  %71 = vrot.lane.b32.xlu0 %v69_v10, %s629_s0 }
  0x23   :  { %63 = vrot.lane.b32.xlu1 %v46_v12, %s628_s24  ;;  %59 = vrot.lane.b32.xlu0 %v56_v13, %s628_s24 }
  0x27   :  { %77 = vrot.lane.b32.xlu1 %v45_v14, %s629_s0  ;;  %75 = vrot.lane.b32.xlu0 %v70_v15, %s629_s0 }
  0x8d   :  { %v62_v16 = vpop.permute.xlu1 %61  ;;  %v58_v17 = vpop.permute.xlu0 %57 }
  0x91   :  { %v74_v18 = vpop.permute.xlu1 %73  ;;  %v72_v19 = vpop.permute.xlu0 %71 }
  0x92   :  { %v80_v24 = vsel %vm79_vm0, %v72_v19, %v74_v18 }
  0x95   :  { %v64_v20 = vpop.permute.xlu1 %63  ;;  %v60_v22 = vpop.permute.xlu0 %59 }
  0x96   :  { %v66_v23 = vsel %vm65_vm1, %v58_v17, %v60_v22  ;;  %v68_v25 = vsel %vm65_vm1, %v62_v16, %v64_v20  ;;  %v67_v26 = vsel %vm65_vm1, %v60_v22, %v62_v16  ;;  %v95_v38 = vsel %vm83_vm3, %v47_v28, %v64_v20 }
  0x97   :  { %v86_v27 = vsel %vm83_vm3, %v38_v7, %v66_v23  ;;  %v89_v34 = vsel %vm83_vm3, %v46_v12, %v67_v26  ;;  %v92_v35 = vsel %vm83_vm3, %v45_v14, %v68_v25 }
  0x98   :  { %v98_v29 = vsel %vm96_vm2, %v86_v27, %v80_v24 }
  0x99   :  { %v78_v30 = vpop.permute.xlu1 %77  ;;  %112 = vrot.lane.b32.xlu0 %v98_v29, %s631_s25  ;;  %v76_v31 = vpop.permute.xlu0 %75  ;;  %v226_v52 = vsel %vm128_vm5, %v98_v29, 0 }
  0x9a   :  { %v81_v32 = vsel %vm79_vm0, %v74_v18, %v76_v31  ;;  %v82_v33 = vsel %vm79_vm0, %v76_v31, %v78_v30  ;;  %v104_v39 = vsel %vm96_vm2, %v95_v38, %v78_v30 }
  0x9b   :  { %v100_v36 = vsel %vm96_vm2, %v89_v34, %v81_v32  ;;  %v102_v37 = vsel %vm96_vm2, %v92_v35, %v82_v33 }
  0x9c   :  { %114 = vrot.lane.b32.xlu1 %v100_v36, %s631_s25  ;;  %v230_v56 = vsel %vm128_vm5, %v102_v37, 0 }
  0x9d   :  { %116 = vrot.lane.b32.xlu0 %v102_v37, %s631_s25 }
  0xa0   :  { %118 = vrot.lane.b32.xlu1 %v104_v39, %s631_s25 }
  0xa1   :  { %318 = vrot.lane.b32.xlu0 %v98_v29, %s632_s26 }
  0xa4   :  { %320 = vrot.lane.b32.xlu1 %v100_v36, %s632_s26 }
  0xa5   :  { %322 = vrot.lane.b32.xlu0 %v102_v37, %s632_s26 }
  0xa8   :  { %324 = vrot.lane.b32.xlu1 %v104_v39, %s632_s26 }
  0xa9   :  { %433 = vperm.xlu0 %575, %v29_v40  }
 0x10b   :  { %v113_v41 = vpop.permute.xlu0 %112 }
 0x10e   :  { %v115_v42 = vpop.permute.xlu1 %114 }
 0x10f   :  { %v117_v43 = vpop.permute.xlu0 %116  ;;  %v121_v44 = vsel %vm120_vm4, %v113_v41, %v115_v42 }
 0x110   :  { %v122_v45 = vsel %vm120_vm4, %v115_v42, %v117_v43  ;;  %v130_v46 = vsel %vm128_vm5, %v121_v44, 0 }
 0x111   :  { %554 = vmatprep.subr.msk.bf16.mxu0 %vm128_vm5, %v122_v45 }
 0x112   :  { %142 = vmatpush1.bf16.msra.mxu0 %v130_v46  ;;  %v119_v47 = vpop.permute.xlu1 %118 }
 0x113   :  { %558 = vmatprep.subr.msk.bf16.mxu0 %vm128_vm5, %v100_v36  ;;  %v319_v49 = vpop.permute.xlu0 %318  ;;  %556 = vmatprep.subr.msk.bf16.mxu1 %vm128_vm5, %v119_v47  ;;  %v123_v50 = vsel %vm120_vm4, %v117_v43, %v119_v47 }
 0x114   :  { %v136_v51 = vsel %vm128_vm5, %v123_v50, 0 }
 0x115   :  { %555 = vmatmul.mubr.msk.bf16.vlgmr.msra.gmra.mrb[0].mxu0 %vm124_vm6, %v553_v48  ;;  %183 = vmatpush1.bf16.msra.mxu1 %v136_v51 }
 0x116   :  { %235 = vmatpush1.bf16.msra.mxu0 %v226_v52  ;;  %560 = vmatprep.subr.msk.bf16.mxu1 %vm128_vm5, %v104_v39  ;;  %v321_v53 = vpop.permute.xlu1 %320 }
 0x117   :  { %v323_v54 = vpop.permute.xlu0 %322  ;;  %266 = vmatprep.mubr.bf16.mxu0 %v630_v21  ;;  %v327_v57 = vsel %vm326_vm7, %v319_v49, %v321_v53 }
 0x118   :  { %v328_v55 = vsel %vm326_vm7, %v321_v53, %v323_v54  ;;  %557 = vmatmul.mubr.msk.bf16.vlgmr.msra.gmra.mrb[0].mxu1 %vm124_vm6, %v553_v48  ;;  %v334_v60 = vsel %vm128_vm5, %v327_v57, 0 }
 0x119   :  { %276 = vmatpush1.bf16.msra.mxu1 %v230_v56  ;;  %563 = vmatprep.subr.msk.bf16.mxu0 %vm128_vm5, %v328_v55 }
 0x11a   :  { %v325_v58 = vpop.permute.xlu1 %324  ;;  %307 = vmatprep.mubr.bf16.mxu1 %v630_v21 }
 0x11b   :  { %565 = vmatprep.subr.msk.bf16.mxu1 %vm128_vm5, %v325_v58  ;;  %v329_v61 = vsel %vm326_vm7, %v323_v54, %v325_v58 }
 0x11c   :  { %v340_v62 = vsel %vm128_vm5, %v329_v61, 0 }
 0x11d   :  { %559 = vmatmul.mubr.msk.bf16.vlgmr.msra.gmra.mrb[4].mxu0 %vm124_vm6, %v105_v59 }
 0x11e   :  { %346 = vmatpush1.bf16.msra.mxu0 %v334_v60  ;;  %377 = vmatprep.mubr.bf16.mxu0 %v630_v21 }
 0x120   :  { %561 = vmatmul.mubr.msk.bf16.vlgmr.msra.gmra.mrb[4].mxu1 %vm124_vm6, %v105_v59 }
 0x121   :  { %387 = vmatpush1.bf16.msra.mxu1 %v340_v62  ;;  %418 = vmatprep.mubr.bf16.mxu1 %v630_v21 }
 0x125   :  { %564 = vmatmul.mubr.msk.bf16.vlgmr.msra.gmra.mrb[8].mxu0 %vm124_vm6, %v562_v63 }
 0x128   :  { %566 = vmatmul.mubr.msk.bf16.vlgmr.msra.gmra.mrb[8].mxu1 %vm124_vm6, %v562_v63  ;;  %v434_v21 = vpop.permute.xlu0 %433 }
 0x1e8   :  { %v175_v0 = vpop.f32.mrb[0].mxu0 }
 0x1e9   :  { %v177_v1 = vpop.f32.mrb[1].mxu0 }
 0x1ea   :  { %v179_v2 = vpop.f32.mrb[2].mxu0 }
 0x1eb   :  { %v180_v3 = vpop.f32.mrb[3].mxu0  ;;  %v216_v4 = vpop.f32.mrb[0].mxu1 }
 0x1ec   :  { %v218_v5 = vpop.f32.mrb[1].mxu1 }
 0x1ed   :  { %v220_v6 = vpop.f32.mrb[2].mxu1 }
 0x1ee   :  { %v221_v7 = vpop.f32.mrb[3].mxu1 }
 0x1f0   :  { %v268_v8 = vpop.f32.mrb[4].mxu0 }
 0x1f1   :  { %v269_v9 = vadd.f32 %v268_v8, %v175_v0  ;;  %v270_v10 = vpop.f32.mrb[5].mxu0 }
 0x1f2   :  { %v271_v11 = vadd.f32 %v270_v10, %v177_v1  ;;  %v272_v12 = vpop.f32.mrb[6].mxu0 }
 0x1f3   :  { %v273_v13 = vpop.f32.mrb[7].mxu0  ;;  %v309_v14 = vpop.f32.mrb[4].mxu1 }
 0x1f4   :  { %v310_v15 = vadd.f32 %v309_v14, %v216_v4  ;;  %v311_v16 = vpop.f32.mrb[5].mxu1 }
 0x1f5   :  { %v312_v17 = vadd.f32 %v311_v16, %v218_v5  ;;  %v313_v18 = vpop.f32.mrb[6].mxu1 }
 0x1f6   :  { %v314_v19 = vpop.f32.mrb[7].mxu1 }
 0x1f8   :  { %v379_v20 = vpop.f32.mrb[8].mxu0 }
 0x1f9   :  { %v427_v22 = vadd.f32 %v379_v20, %v269_v9  ;;  %v381_v23 = vpop.f32.mrb[9].mxu0 }
 0x1fa   :  { %v428_v24 = vadd.f32 %v381_v23, %v271_v11  ;;  %v383_v25 = vpop.f32.mrb[10].mxu0 }
 0x1fb   :  { %v384_v26 = vpop.f32.mrb[11].mxu0  ;;  %v420_v27 = vpop.f32.mrb[8].mxu1  ;;  %v436_v28 = vadd.f32 %v434_v21, %v427_v22 }
 0x1fc   :  { %v429_v29 = vadd.f32 %v420_v27, %v310_v15  ;;  %v422_v30 = vpop.f32.mrb[9].mxu1  ;;  %v437_v39 = vadd.f32 %v434_v21, %v428_v24 }
 0x1fd   :  { %v430_v31 = vadd.f32 %v422_v30, %v312_v17  ;;  %v424_v32 = vpop.f32.mrb[10].mxu1  ;;  %v440_v33 = vmax.f32 %v436_v28, 0.0 }
 0x1fe   :  { %v438_v34 = vadd.f32 %v434_v21, %v429_v29  ;;  %v425_v35 = vpop.f32.mrb[11].mxu1  ;;  %v441_v40 = vmax.f32 %v437_v39, 0.0 }
 0x1ff   :  { %v439_v36 = vadd.f32 %v434_v21, %v430_v31  ;;  %448 = vrot.lane.b32.xlu1 %v440_v33, %s628_s24 }
 0x200   :  { %v442_v37 = vmax.f32 %v438_v34, 0.0 }
 0x201   :  { %v443_v38 = vmax.f32 %v439_v36, 0.0 }
 0x202   :  { %452 = vrot.lane.b32.xlu0 %v442_v37, %s628_s24 }
 0x203   :  { %454 = vrot.lane.b32.xlu1 %v443_v38, %s628_s24 }
 0x206   :  { %468 = vrot.lane.b32.xlu0 %v440_v33, %s629_s0 }
 0x207   :  { %450 = vrot.lane.b32.xlu1 %v441_v40, %s628_s24 }
 0x20a   :  { %472 = vrot.lane.b32.xlu0 %v442_v37, %s629_s0 }
 0x20b   :  { %470 = vrot.lane.b32.xlu1 %v441_v40, %s629_s0 }
 0x20f   :  { %474 = vrot.lane.b32.xlu1 %v443_v38, %s629_s0 }
 0x271   :  { %v449_v41 = vpop.permute.xlu1 %448 }
 0x274   :  { %v453_v42 = vpop.permute.xlu0 %452 }
 0x275   :  { %v455_v43 = vpop.permute.xlu1 %454 }
 0x276   :  { %v459_v47 = vsel %vm65_vm1, %v453_v42, %v455_v43  ;;  %v467_v48 = vmax.f32 %v443_v38, %v455_v43 }
 0x277   :  { %v466_v50 = vmax.f32 %v442_v37, %v459_v47 }
 0x278   :  { %v469_v45 = vpop.permute.xlu0 %468 }
 0x279   :  { %v451_v44 = vpop.permute.xlu1 %450 }
 0x27a   :  { %v458_v51 = vsel %vm65_vm1, %v451_v44, %v453_v42  ;;  %v457_v53 = vsel %vm65_vm1, %v449_v41, %v451_v44 }
 0x27b   :  { %v465_v58 = vmax.f32 %v441_v40, %v458_v51  ;;  %v464_v60 = vmax.f32 %v440_v33, %v457_v53 }
 0x27c   :  { %v473_v49 = vpop.permute.xlu0 %472 }
 0x27d   :  { %v471_v46 = vpop.permute.xlu1 %470 }
 0x27e   :  { %v478_v56 = vsel %vm79_vm0, %v471_v46, %v473_v49  ;;  %v477_v59 = vsel %vm79_vm0, %v469_v45, %v471_v46 }
 0x27f   :  { %v485_v61 = vmax.f32 %v465_v58, %v478_v56  ;;  %v484_v62 = vmax.f32 %v464_v60, %v477_v59 }
 0x281   :  { %v475_v52 = vpop.permute.xlu1 %474 }
 0x282   :  { %v479_v54 = vsel %vm79_vm0, %v473_v49, %v475_v52  ;;  %v487_v55 = vmax.f32 %v467_v48, %v475_v52 }
 0x283   :  { %v486_v57 = vmax.f32 %v466_v50, %v479_v54 }
 0x284   :  { %498 = vrot.lane.b32.xlu1 %v487_v55, %s631_s25 }
 0x285   :  { %496 = vrot.lane.b32.xlu0 %v486_v57, %s631_s25 }
 0x288   :  { %494 = vrot.lane.b32.xlu1 %v485_v61, %s631_s25 }
 0x289   :  { %492 = vrot.lane.b32.xlu0 %v484_v62, %s631_s25 }
 0x28c   :  { %514 = vrot.lane.b32.xlu1 %v485_v61, %s632_s26 }
 0x28d   :  { %512 = vrot.lane.b32.xlu0 %v484_v62, %s632_s26 }
 0x290   :  { %518 = vrot.lane.b32.xlu1 %v487_v55, %s632_s26 }
 0x291   :  { %516 = vrot.lane.b32.xlu0 %v486_v57, %s632_s26 }
 0x2f6   :  { %v499_v63 = vpop.permute.xlu1 %498 }
 0x2f7   :  { %v497_v0 = vpop.permute.xlu0 %496  ;;  %v511_v10 = vmax.f32 %v487_v55, %v499_v63 }
 0x2f8   :  { %v503_v7 = vsel %vm120_vm4, %v497_v0, %v499_v63 }
 0x2f9   :  { %v510_v13 = vmax.f32 %v486_v57, %v503_v7 }
 0x2fa   :  { %v495_v1 = vpop.permute.xlu1 %494 }
 0x2fb   :  { %v493_v2 = vpop.permute.xlu0 %492  ;;  %v502_v8 = vsel %vm120_vm4, %v495_v1, %v497_v0 }
 0x2fc   :  { %v501_v3 = vsel %vm120_vm4, %v493_v2, %v495_v1  ;;  %v509_v14 = vmax.f32 %v485_v61, %v502_v8 }
 0x2fd   :  { %v508_v5 = vmax.f32 %v484_v62, %v501_v3 }
 0x2fe   :  { %v515_v4 = vpop.permute.xlu1 %514 }
 0x2ff   :  { %v513_v6 = vpop.permute.xlu0 %512 }
 0x300   :  { %v521_v9 = vsel %vm326_vm7, %v513_v6, %v515_v4 }
 0x301   :  { %v528_v11 = vmax.f32 %v508_v5, %v521_v9 }
 0x302   :  { %v519_v12 = vpop.permute.xlu1 %518 }
 0x303   :  { %534 = vst [vmem:[#allocation5] sm:$0xff] %v528_v11  ;;  %v531_v15 = vmax.f32 %v511_v10, %v519_v12  ;;  %v517_v16 = vpop.permute.xlu0 %516 }
 0x304   :  { %v522_v17 = vsel %vm326_vm7, %v515_v4, %v517_v16  ;;  %v523_v18 = vsel %vm326_vm7, %v517_v16, %v519_v12 }
 0x305   :  { %v533_v19 = vsel %vm532_vm8, %v531_v15, 0.0  ;;  %v529_v20 = vmax.f32 %v509_v14, %v522_v17  ;;  %v530_v21 = vmax.f32 %v510_v13, %v523_v18 }
 0x306   :  { %537 = vst [vmem:[#allocation5 + $0x18] sm:$0xff] %v533_v19 }
 0x307   :  { %535 = vst [vmem:[#allocation5 + $0x8] sm:$0xff] %v529_v20  ;;  %536 = vst [vmem:[#allocation5 + $0x10] sm:$0xff] %v530_v21 }
 0x308   :  { %611 = shalt.err (!%p608_p12)
}
 0x309   :  { %s612_s11 = scalar_lea.hbm %s782_s3, 512 }
 0x30a   :  { %p613_p13 = scmp.ne.s32.totalorder %s782_s3, %s612_s11  ;;  %p616_p0 = scmp.lt.u32.totalorder %s612_s11, %s782_s3 }
 0x30c   :  { %p618_p1 = pnand %p616_p0, %p613_p13 }
 0x30e   :  { %621 = shalt.err (!%p618_p1)
}
 0x30f   :  { %547 = dma.vmem_to_hbm [thread:$0]  %s545_s7, 512, %s782_s3, [#allocation4]  }
 0x310   :  { %624 = dma.done.wait [#allocation4], 512  }
 0x311   :  { %625 = vsyncadd [#allocation4], 4294966784 }
 0x312   :  { %551 = vsyncpa [#allocation3], 1 }
 0x313   :  { %552 = vsyncpa [#allocation4], 1 }

// kernel: tpu_custom_call.1
= control target key start
LH: loop header
LB: loop body
LE: loop exit
PB: predicated region body
PF: predicated region fallthrough
CT: control target
= control target key end

     0   :  { %8 = vsyncpa [#allocation3], 0  ;;  %s779_s0 = inlined_call_operand.hbm [shape: bf16[4,512], index: 0, kind: input, shape index: {}]   ;;  %s780_s1 = inlined_call_operand.vmem [shape: bf16[3,8,12], index: 1, kind: input, shape index: {}]   ;;  %s781_s2 = inlined_call_operand.vmem [shape: f32[8,1], index: 2, kind: input, shape index: {}]   ;;  %s782_s3 = inlined_call_operand.hbm [shape: f32[8,512], index: 3, kind: output, shape index: {}]  }
   0x1   :  { %9 = vsyncpa [#allocation4], 0  ;;  %s626_s12 = smov [#allocation2]   ;;  %s578_s16 = scalar_lea.hbm %s779_s0, 128 }
   0x2   :  { %s16_s13 = sshll.u32 %s626_s12, 4  ;;  %p579_p0 = scmp.ne.s32.totalorder %s779_s0, %s578_s16  ;;  %s17_s13 = int_to_ptr.vmem [resolvable:$true] %s16_s13 }
   0x3   :  { %p582_p1 = scmp.lt.u32.totalorder %s578_s16, %s779_s0 }
   0x5   :  { %p584_p2 = pnand %p582_p1, %p579_p0 }
   0x7   :  { %587 = shalt.err (!%p584_p2)
}
   0x8   :  { %s588_s21 = scalar_lea.vmem %s17_s13, 128  ;;  %p593_p4 = scmp.lt.s32.totalorder %s17_s13, %s17_s13 }
   0x9   :  { %p589_p3 = scmp.ne.s32.totalorder %s17_s13, %s588_s21  ;;  %p594_p5 = scmp.lt.s32.totalorder %s588_s21, %s588_s21 }
   0xb   :  { %p595_p6 = por %p594_p5, %p593_p4 }
   0xd   :  { %p596_p7 = pnand %p595_p6, %p589_p3 }
   0xf   :  { %599 = shalt.err (!%p596_p7)
}
  0x10   :  { %19 = dma.hbm_to_vmem [thread:$0]  %s779_s0, 128, %s17_s13, [#allocation3]  }
  0x11   :  { %622 = dma.done.wait [#allocation3], 128  }
  0x12   :  { %623 = vsyncadd [#allocation3], 4294967168  ;;  %v35_v0 = vlaneseq  ;;  %v627_v1 = vmov 1983009808   ;;  %v28_v6 = vld [vmem:[#allocation2] sm:$0xff]  ;;  %s628_s24 = smov 127  }
  0x13   :  { %v33_v2 = vunpack.c.l.s4 %v627_v1  ;;  %v48_v8 = vcombine.low %v28_v6, %v28_v6  ;;  %v31_v11 = vcombine.high %v28_v6, %v28_v6  ;;  %s629_s0 = smov 126   ;;  %vm79_vm0 = vcmask 1031168   ;;  %s631_s25 = smov 112   ;;  %v29_v40 = vld [vmem:[%s781_s2] sm:$0xff]  ;;  %v562_v63 = vld [vmem:[%s780_s1 + $0x8] sm:$0xf] }
  0x14   :  { %v36_v3 = vshrl.u32 %v35_v0, 7  ;;  %vm65_vm1 = vcmask 1039360   ;;  %v630_v21 = vmov 0   ;;  %vm96_vm2 = vcmask 1043456   ;;  %s632_s26 = smov 96  }
  0x15   :  { %v34_v4 = vunpack.c.0.s8 %v33_v2  ;;  %173 = vmatprep.mubr.bf16.mxu0 %v630_v21  ;;  %214 = vmatprep.mubr.bf16.mxu1 %v630_v21  ;;  %vm83_vm3 = vcmask 1041408   ;;  %vm120_vm4 = vcmask 916480   ;;  %vm128_vm5 = vcmask 1045504   ;;  %v553_v48 = vld [vmem:[%s780_s1 + $0x4] sm:$0xf] }
  0x16   :  { %575 = vset.pattern.permute.xlu0 %v630_v21  ;;  %vm124_vm6 = vcmask 97280   ;;  %vm326_vm7 = vcmask 785408   ;;  %v105_v59 = vld [vmem:[%s780_s1] sm:$0xf]  ;;  %vm532_vm8 = vcmask 490496   ;;  %s633_s1 = smov [#allocation5]  }
  0x17   :  { %v37_v5 = vsub.s32 %v34_v4, %v36_v3  ;;  %s544_s7 = sshll.u32 %s633_s1, 4  ;;  %s545_s7 = int_to_ptr.vmem [resolvable:$true] %s544_s7 }
  0x18   :  { %s600_s8 = scalar_lea.vmem %s545_s7, 512  ;;  %p605_p9 = scmp.lt.s32.totalorder %s545_s7, %s545_s7 }
  0x19   :  { %v38_v7 = vrot.slane %v28_v6, %v37_v5  ;;  %v55_v9 = vrot.slane %v48_v8, %v37_v5  ;;  %v45_v14 = vrot.slane %v31_v11, %v37_v5  ;;  %p601_p8 = scmp.ne.s32.totalorder %s545_s7, %s600_s8  ;;  %p606_p10 = scmp.lt.s32.totalorder %s600_s8, %s600_s8 }
  0x1b   :  { %61 = vrot.lane.b32.xlu1 %v38_v7, %s628_s24  ;;  %57 = vrot.lane.b32.xlu0 %v55_v9, %s628_s24  ;;  %v69_v10 = vcombine.low %v38_v7, %v38_v7  ;;  %v46_v12 = vcombine.high %v38_v7, %v38_v7  ;;  %v56_v13 = vcombine.high %v55_v9, %v55_v9  ;;  %p607_p11 = por %p606_p10, %p605_p9 }
  0x1c   :  { %v70_v15 = vcombine.low %v45_v14, %v45_v14  ;;  %v47_v28 = vcombine.high %v45_v14, %v45_v14 }
  0x1d   :  { %p608_p12 = pnand %p607_p11, %p601_p8 }
  0x1f   :  { %73 = vrot.lane.b32.xlu1 %v38_v7, %s629_s0  ;;  %71 = vrot.lane.b32.xlu0 %v69_v10, %s629_s0 }
  0x23   :  { %63 = vrot.lane.b32.xlu1 %v46_v12, %s628_s24  ;;  %59 = vrot.lane.b32.xlu0 %v56_v13, %s628_s24 }
  0x27   :  { %77 = vrot.lane.b32.xlu1 %v45_v14, %s629_s0  ;;  %75 = vrot.lane.b32.xlu0 %v70_v15, %s629_s0 }
  0x8d   :  { %v62_v16 = vpop.permute.xlu1 %61  ;;  %v58_v17 = vpop.permute.xlu0 %57 }
  0x91   :  { %v74_v18 = vpop.permute.xlu1 %73  ;;  %v72_v19 = vpop.permute.xlu0 %71 }
  0x92   :  { %v80_v24 = vsel %vm79_vm0, %v72_v19, %v74_v18 }
  0x95   :  { %v64_v20 = vpop.permute.xlu1 %63  ;;  %v60_v22 = vpop.permute.xlu0 %59 }
  0x96   :  { %v66_v23 = vsel %vm65_vm1, %v58_v17, %v60_v22  ;;  %v68_v25 = vsel %vm65_vm1, %v62_v16, %v64_v20  ;;  %v67_v26 = vsel %vm65_vm1, %v60_v22, %v62_v16  ;;  %v95_v38 = vsel %vm83_vm3, %v47_v28, %v64_v20 }
  0x97   :  { %v86_v27 = vsel %vm83_vm3, %v38_v7, %v66_v23  ;;  %v89_v34 = vsel %vm83_vm3, %v46_v12, %v67_v26  ;;  %v92_v35 = vsel %vm83_vm3, %v45_v14, %v68_v25 }
  0x98   :  { %v98_v29 = vsel %vm96_vm2, %v86_v27, %v80_v24 }
  0x99   :  { %v78_v30 = vpop.permute.xlu1 %77  ;;  %112 = vrot.lane.b32.xlu0 %v98_v29, %s631_s25  ;;  %v76_v31 = vpop.permute.xlu0 %75  ;;  %v226_v52 = vsel %vm128_vm5, %v98_v29, 0 }
  0x9a   :  { %v81_v32 = vsel %vm79_vm0, %v74_v18, %v76_v31  ;;  %v82_v33 = vsel %vm79_vm0, %v76_v31, %v78_v30  ;;  %v104_v39 = vsel %vm96_vm2, %v95_v38, %v78_v30 }
  0x9b   :  { %v100_v36 = vsel %vm96_vm2, %v89_v34, %v81_v32  ;;  %v102_v37 = vsel %vm96_vm2, %v92_v35, %v82_v33 }
  0x9c   :  { %114 = vrot.lane.b32.xlu1 %v100_v36, %s631_s25  ;;  %v230_v56 = vsel %vm128_vm5, %v102_v37, 0 }
  0x9d   :  { %116 = vrot.lane.b32.xlu0 %v102_v37, %s631_s25 }
  0xa0   :  { %118 = vrot.lane.b32.xlu1 %v104_v39, %s631_s25 }
  0xa1   :  { %318 = vrot.lane.b32.xlu0 %v98_v29, %s632_s26 }
  0xa4   :  { %320 = vrot.lane.b32.xlu1 %v100_v36, %s632_s26 }
  0xa5   :  { %322 = vrot.lane.b32.xlu0 %v102_v37, %s632_s26 }
  0xa8   :  { %324 = vrot.lane.b32.xlu1 %v104_v39, %s632_s26 }
  0xa9   :  { %433 = vperm.xlu0 %575, %v29_v40  }
 0x10b   :  { %v113_v41 = vpop.permute.xlu0 %112 }
 0x10e   :  { %v115_v42 = vpop.permute.xlu1 %114 }
 0x10f   :  { %v117_v43 = vpop.permute.xlu0 %116  ;;  %v121_v44 = vsel %vm120_vm4, %v113_v41, %v115_v42 }
 0x110   :  { %v122_v45 = vsel %vm120_vm4, %v115_v42, %v117_v43  ;;  %v130_v46 = vsel %vm128_vm5, %v121_v44, 0 }
 0x111   :  { %554 = vmatprep.subr.msk.bf16.mxu0 %vm128_vm5, %v122_v45 }
 0x112   :  { %142 = vmatpush1.bf16.msra.mxu0 %v130_v46  ;;  %v119_v47 = vpop.permute.xlu1 %118 }
 0x113   :  { %558 = vmatprep.subr.msk.bf16.mxu0 %vm128_vm5, %v100_v36  ;;  %v319_v49 = vpop.permute.xlu0 %318  ;;  %556 = vmatprep.subr.msk.bf16.mxu1 %vm128_vm5, %v119_v47  ;;  %v123_v50 = vsel %vm120_vm4, %v117_v43, %v119_v47 }
 0x114   :  { %v136_v51 = vsel %vm128_vm5, %v123_v50, 0 }
 0x115   :  { %555 = vmatmul.mubr.msk.bf16.vlgmr.msra.gmra.mrb[0].mxu0 %vm124_vm6, %v553_v48  ;;  %183 = vmatpush1.bf16.msra.mxu1 %v136_v51 }
 0x116   :  { %235 = vmatpush1.bf16.msra.mxu0 %v226_v52  ;;  %560 = vmatprep.subr.msk.bf16.mxu1 %vm128_vm5, %v104_v39  ;;  %v321_v53 = vpop.permute.xlu1 %320 }
 0x117   :  { %v323_v54 = vpop.permute.xlu0 %322  ;;  %266 = vmatprep.mubr.bf16.mxu0 %v630_v21  ;;  %v327_v57 = vsel %vm326_vm7, %v319_v49, %v321_v53 }
 0x118   :  { %v328_v55 = vsel %vm326_vm7, %v321_v53, %v323_v54  ;;  %557 = vmatmul.mubr.msk.bf16.vlgmr.msra.gmra.mrb[0].mxu1 %vm124_vm6, %v553_v48  ;;  %v334_v60 = vsel %vm128_vm5, %v327_v57, 0 }
 0x119   :  { %276 = vmatpush1.bf16.msra.mxu1 %v230_v56  ;;  %563 = vmatprep.subr.msk.bf16.mxu0 %vm128_vm5, %v328_v55 }
 0x11a   :  { %v325_v58 = vpop.permute.xlu1 %324  ;;  %307 = vmatprep.mubr.bf16.mxu1 %v630_v21 }
 0x11b   :  { %565 = vmatprep.subr.msk.bf16.mxu1 %vm128_vm5, %v325_v58  ;;  %v329_v61 = vsel %vm326_vm7, %v323_v54, %v325_v58 }
 0x11c   :  { %v340_v62 = vsel %vm128_vm5, %v329_v61, 0 }
 0x11d   :  { %559 = vmatmul.mubr.msk.bf16.vlgmr.msra.gmra.mrb[4].mxu0 %vm124_vm6, %v105_v59 }
 0x11e   :  { %346 = vmatpush1.bf16.msra.mxu0 %v334_v60  ;;  %377 = vmatprep.mubr.bf16.mxu0 %v630_v21 }
 0x120   :  { %561 = vmatmul.mubr.msk.bf16.vlgmr.msra.gmra.mrb[4].mxu1 %vm124_vm6, %v105_v59 }
 0x121   :  { %387 = vmatpush1.bf16.msra.mxu1 %v340_v62  ;;  %418 = vmatprep.mubr.bf16.mxu1 %v630_v21 }
 0x125   :  { %564 = vmatmul.mubr.msk.bf16.vlgmr.msra.gmra.mrb[8].mxu0 %vm124_vm6, %v562_v63 }
 0x128   :  { %566 = vmatmul.mubr.msk.bf16.vlgmr.msra.gmra.mrb[8].mxu1 %vm124_vm6, %v562_v63  ;;  %v434_v21 = vpop.permute.xlu0 %433 }
 0x1e8   :  { %v175_v0 = vpop.f32.mrb[0].mxu0 }
 0x1e9   :  { %v177_v1 = vpop.f32.mrb[1].mxu0 }
 0x1ea   :  { %v179_v2 = vpop.f32.mrb[2].mxu0 }
 0x1eb   :  { %v180_v3 = vpop.f32.mrb[3].mxu0  ;;  %v216_v4 = vpop.f32.mrb[0].mxu1 }
 0x1ec   :  { %v218_v5 = vpop.f32.mrb[1].mxu1 }
 0x1ed   :  { %v220_v6 = vpop.f32.mrb[2].mxu1 }
 0x1ee   :  { %v221_v7 = vpop.f32.mrb[3].mxu1 }
 0x1f0   :  { %v268_v8 = vpop.f32.mrb[4].mxu0 }
 0x1f1   :  { %v269_v9 = vadd.f32 %v268_v8, %v175_v0  ;;  %v270_v10 = vpop.f32.mrb[5].mxu0 }
 0x1f2   :  { %v271_v11 = vadd.f32 %v270_v10, %v177_v1  ;;  %v272_v12 = vpop.f32.mrb[6].mxu0 }
 0x1f3   :  { %v273_v13 = vpop.f32.mrb[7].mxu0  ;;  %v309_v14 = vpop.f32.mrb[4].mxu1 }
 0x1f4   :  { %v310_v15 = vadd.f32 %v309_v14, %v216_v4  ;;  %v311_v16 = vpop.f32.mrb[5].mxu1 }
 0x1f5   :  { %v312_v17 = vadd.f32 %v311_v16, %v218_v5  ;;  %v313_v18 = vpop.f32.mrb[6].mxu1 }
 0x1f6   :  { %v314_v19 = vpop.f32.mrb[7].mxu1 }
 0x1f8   :  { %v379_v20 = vpop.f32.mrb[8].mxu0 }
 0x1f9   :  { %v427_v22 = vadd.f32 %v379_v20, %v269_v9  ;;  %v381_v23 = vpop.f32.mrb[9].mxu0 }
 0x1fa   :  { %v428_v24 = vadd.f32 %v381_v23, %v271_v11  ;;  %v383_v25 = vpop.f32.mrb[10].mxu0 }
 0x1fb   :  { %v384_v26 = vpop.f32.mrb[11].mxu0  ;;  %v420_v27 = vpop.f32.mrb[8].mxu1  ;;  %v436_v28 = vadd.f32 %v434_v21, %v427_v22 }
 0x1fc   :  { %v429_v29 = vadd.f32 %v420_v27, %v310_v15  ;;  %v422_v30 = vpop.f32.mrb[9].mxu1  ;;  %v437_v39 = vadd.f32 %v434_v21, %v428_v24 }
 0x1fd   :  { %v430_v31 = vadd.f32 %v422_v30, %v312_v17  ;;  %v424_v32 = vpop.f32.mrb[10].mxu1  ;;  %v440_v33 = vmax.f32 %v436_v28, 0.0 }
 0x1fe   :  { %v438_v34 = vadd.f32 %v434_v21, %v429_v29  ;;  %v425_v35 = vpop.f32.mrb[11].mxu1  ;;  %v441_v40 = vmax.f32 %v437_v39, 0.0 }
 0x1ff   :  { %v439_v36 = vadd.f32 %v434_v21, %v430_v31  ;;  %448 = vrot.lane.b32.xlu1 %v440_v33, %s628_s24 }
 0x200   :  { %v442_v37 = vmax.f32 %v438_v34, 0.0 }
 0x201   :  { %v443_v38 = vmax.f32 %v439_v36, 0.0 }
 0x202   :  { %452 = vrot.lane.b32.xlu0 %v442_v37, %s628_s24 }
 0x203   :  { %454 = vrot.lane.b32.xlu1 %v443_v38, %s628_s24 }
 0x206   :  { %468 = vrot.lane.b32.xlu0 %v440_v33, %s629_s0 }
 0x207   :  { %450 = vrot.lane.b32.xlu1 %v441_v40, %s628_s24 }
 0x20a   :  { %472 = vrot.lane.b32.xlu0 %v442_v37, %s629_s0 }
 0x20b   :  { %470 = vrot.lane.b32.xlu1 %v441_v40, %s629_s0 }
 0x20f   :  { %474 = vrot.lane.b32.xlu1 %v443_v38, %s629_s0 }
 0x271   :  { %v449_v41 = vpop.permute.xlu1 %448 }
 0x274   :  { %v453_v42 = vpop.permute.xlu0 %452 }
 0x275   :  { %v455_v43 = vpop.permute.xlu1 %454 }
 0x276   :  { %v459_v47 = vsel %vm65_vm1, %v453_v42, %v455_v43  ;;  %v467_v48 = vmax.f32 %v443_v38, %v455_v43 }
 0x277   :  { %v466_v50 = vmax.f32 %v442_v37, %v459_v47 }
 0x278   :  { %v469_v45 = vpop.permute.xlu0 %468 }
 0x279   :  { %v451_v44 = vpop.permute.xlu1 %450 }
 0x27a   :  { %v458_v51 = vsel %vm65_vm1, %v451_v44, %v453_v42  ;;  %v457_v53 = vsel %vm65_vm1, %v449_v41, %v451_v44 }
 0x27b   :  { %v465_v58 = vmax.f32 %v441_v40, %v458_v51  ;;  %v464_v60 = vmax.f32 %v440_v33, %v457_v53 }
 0x27c   :  { %v473_v49 = vpop.permute.xlu0 %472 }
 0x27d   :  { %v471_v46 = vpop.permute.xlu1 %470 }
 0x27e   :  { %v478_v56 = vsel %vm79_vm0, %v471_v46, %v473_v49  ;;  %v477_v59 = vsel %vm79_vm0, %v469_v45, %v471_v46 }
 0x27f   :  { %v485_v61 = vmax.f32 %v465_v58, %v478_v56  ;;  %v484_v62 = vmax.f32 %v464_v60, %v477_v59 }
 0x281   :  { %v475_v52 = vpop.permute.xlu1 %474 }
 0x282   :  { %v479_v54 = vsel %vm79_vm0, %v473_v49, %v475_v52  ;;  %v487_v55 = vmax.f32 %v467_v48, %v475_v52 }
 0x283   :  { %v486_v57 = vmax.f32 %v466_v50, %v479_v54 }
 0x284   :  { %498 = vrot.lane.b32.xlu1 %v487_v55, %s631_s25 }
 0x285   :  { %496 = vrot.lane.b32.xlu0 %v486_v57, %s631_s25 }
 0x288   :  { %494 = vrot.lane.b32.xlu1 %v485_v61, %s631_s25 }
 0x289   :  { %492 = vrot.lane.b32.xlu0 %v484_v62, %s631_s25 }
 0x28c   :  { %514 = vrot.lane.b32.xlu1 %v485_v61, %s632_s26 }
 0x28d   :  { %512 = vrot.lane.b32.xlu0 %v484_v62, %s632_s26 }
 0x290   :  { %518 = vrot.lane.b32.xlu1 %v487_v55, %s632_s26 }
 0x291   :  { %516 = vrot.lane.b32.xlu0 %v486_v57, %s632_s26 }
 0x2f6   :  { %v499_v63 = vpop.permute.xlu1 %498 }
 0x2f7   :  { %v497_v0 = vpop.permute.xlu0 %496  ;;  %v511_v10 = vmax.f32 %v487_v55, %v499_v63 }
 0x2f8   :  { %v503_v7 = vsel %vm120_vm4, %v497_v0, %v499_v63 }
 0x2f9   :  { %v510_v13 = vmax.f32 %v486_v57, %v503_v7 }
 0x2fa   :  { %v495_v1 = vpop.permute.xlu1 %494 }
 0x2fb   :  { %v493_v2 = vpop.permute.xlu0 %492  ;;  %v502_v8 = vsel %vm120_vm4, %v495_v1, %v497_v0 }
 0x2fc   :  { %v501_v3 = vsel %vm120_vm4, %v493_v2, %v495_v1  ;;  %v509_v14 = vmax.f32 %v485_v61, %v502_v8 }
 0x2fd   :  { %v508_v5 = vmax.f32 %v484_v62, %v501_v3 }
 0x2fe   :  { %v515_v4 = vpop.permute.xlu1 %514 }
 0x2ff   :  { %v513_v6 = vpop.permute.xlu0 %512 }
 0x300   :  { %v521_v9 = vsel %vm326_vm7, %v513_v6, %v515_v4 }
 0x301   :  { %v528_v11 = vmax.f32 %v508_v5, %v521_v9 }
 0x302   :  { %v519_v12 = vpop.permute.xlu1 %518 }
 0x303   :  { %534 = vst [vmem:[#allocation5] sm:$0xff] %v528_v11  ;;  %v531_v15 = vmax.f32 %v511_v10, %v519_v12  ;;  %v517_v16 = vpop.permute.xlu0 %516 }
 0x304   :  { %v522_v17 = vsel %vm326_vm7, %v515_v4, %v517_v16  ;;  %v523_v18 = vsel %vm326_vm7, %v517_v16, %v519_v12 }
 0x305   :  { %v533_v19 = vsel %vm532_vm8, %v531_v15, 0.0  ;;  %v529_v20 = vmax.f32 %v509_v14, %v522_v17  ;;  %v530_v21 = vmax.f32 %v510_v13, %v523_v18 }
 0x306   :  { %537 = vst [vmem:[#allocation5 + $0x18] sm:$0xff] %v533_v19 }
 0x307   :  { %535 = vst [vmem:[#allocation5 + $0x8] sm:$0xff] %v529_v20  ;;  %536 = vst [vmem:[#allocation5 + $0x10] sm:$0xff] %v530_v21 }
 0x308   :  { %611 = shalt.err (!%p608_p12)
}
 0x309   :  { %s612_s11 = scalar_lea.hbm %s782_s3, 512 }
 0x30a   :  { %p613_p13 = scmp.ne.s32.totalorder %s782_s3, %s612_s11  ;;  %p616_p0 = scmp.lt.u32.totalorder %s612_s11, %s782_s3 }
 0x30c   :  { %p618_p1 = pnand %p616_p0, %p613_p13 }
 0x30e   :  { %621 = shalt.err (!%p618_p1)
}
 0x30f   :  { %547 = dma.vmem_to_hbm [thread:$0]  %s545_s7, 512, %s782_s3, [#allocation4]  }
 0x310   :  { %624 = dma.done.wait [#allocation4], 512  }
 0x311   :  { %625 = vsyncadd [#allocation4], 4294966784 }
 0x312   :  { %551 = vsyncpa [#allocation3], 1 }
 0x313   :  { %552 = vsyncpa [#allocation4], 1 }

</bundles_post_ra>
